<compile_context>
chip_gen: v6e
topology: v6e:2x2x1
jax: 0.10.0
libtpu: 0.0.40
codegen_flags: <defaults>
</compile_context>

<pallas_src>
import functools

import jax
import jax.numpy as jnp
from jax.experimental import pallas as pl
from jax.experimental.pallas import tpu as pltpu

# Conservative VMEM budgets (sized against v7x's 32 MiB scoped default / 64 MiB physical;
# v5e/v6e have more headroom, so these are safe on every generation).
_SINGLE_BLOCK_VMEM_BUDGET = 16 * 1024 * 1024   # whole-problem-in-VMEM path
_GRID_BLOCK_VMEM_BUDGET = 12 * 1024 * 1024     # per-block (double-buffered) working set


def linear_relu_kernel(x_ref, w_ref, b_ref, o_ref):
    # x_ref: (Bm, D), w_ref: (D, H), b_ref: (1, H), o_ref: (Bm, H)
    # f32 accumulation on the MXU; bias-add + ReLU fused in the epilogue.
    # (For exact f32 accumulation at large D, add precision=jax.lax.Precision.HIGHEST.)
    acc = jnp.dot(x_ref[...], w_ref[...], preferred_element_type=jnp.float32)
    acc = acc + b_ref[...]                       # broadcast (1, H) over rows
    o_ref[...] = jnp.maximum(acc, 0.0).astype(o_ref.dtype)


def prepare_params(weight, bias):
    """One-time parameter prep (call at init, NOT per forward).

    PyTorch nn.Linear stores weight as (H, D) and bias as (H,).  We keep the
    transposed (D, H) weight and a (1, H) bias so the jit'd forward does zero
    per-call layout work.
    """
    w_t = jnp.asarray(weight).T
    b = jnp.asarray(bias).reshape(1, -1)
    return w_t, b


def _bytes_accessed(B, D, H, itemsize):
    return itemsize * (B * D + D * H + H + B * H)


@functools.partial(jax.jit, static_argnames=("single_block_budget",))
def model_forward(x, w_t, b, single_block_budget=_SINGLE_BLOCK_VMEM_BUDGET):
    """Fused Linear(D->H) + ReLU.  x: (B, D), w_t: (D, H), b: (1, H) or (H,)."""
    B, D = x.shape
    H = w_t.shape[1]
    if b.ndim == 1:
        b = b.reshape(1, H)
    itemsize = jnp.dtype(x.dtype).itemsize

    cost = pl.CostEstimate(
        flops=2 * B * D * H,
        transcendentals=0,
        bytes_accessed=_bytes_accessed(B, D, H, itemsize),
    )

    # ---- Path 1: whole problem resident in VMEM, no grid, no pipeline tax. ----
    if _bytes_accessed(B, D, H, itemsize) <= single_block_budget:
        return pl.pallas_call(
            linear_relu_kernel,
            out_shape=jax.ShapeDtypeStruct((B, H), x.dtype),
            in_specs=[pl.BlockSpec(memory_space=pltpu.MemorySpace.VMEM)] * 3,
            out_specs=pl.BlockSpec(memory_space=pltpu.MemorySpace.VMEM),
            cost_estimate=cost,
        )(x, w_t, b)

    # ---- Path 2: very large batch -> few, large, parallel batch blocks. ----
    # Working set per block ~ 2 * block_b * (D + H) * itemsize (double-buffered x + out).
    per_row = itemsize * (D + H)
    max_block_b = max(8, (_GRID_BLOCK_VMEM_BUDGET // (2 * per_row)) // 8 * 8)
    num_blocks = max(2, pl.cdiv(B, max_block_b))          # >=2: both v7x TCs get work
    block_b = pl.cdiv(pl.cdiv(B, num_blocks), 8) * 8      # sublane-aligned
    grid = (pl.cdiv(B, block_b),)

    # No batch padding / output slicing: Pallas masks the ragged last block's
    # loads and stores, so tail "rows" never touch HBM.
    return pl.pallas_call(
        linear_relu_kernel,
        out_shape=jax.ShapeDtypeStruct((B, H), x.dtype),
        grid=grid,
        in_specs=[
            pl.BlockSpec((block_b, D), lambda i: (i, 0)),
            pl.BlockSpec((D, H), lambda i: (0, 0)),   # weight resident across blocks
            pl.BlockSpec((1, H), lambda i: (0, 0)),   # bias resident across blocks
        ],
        out_specs=pl.BlockSpec((block_b, H), lambda i: (i, 0)),
        compiler_params=pltpu.CompilerParams(
            dimension_semantics=("parallel",),
            vmem_limit_bytes=32 * 1024 * 1024,
        ),
        cost_estimate=cost,
    )(x, w_t, b)


if __name__ == "__main__":
    # Module hyperparameters (NUM_CLASSES is unused in forward).
    INPUT_DIM = 32
    HIDDEN_SIZE = 64
    NUM_CLASSES = 10  # unused in forward
    BATCH = 8

    key = jax.random.PRNGKey(0)
    kx, kw, kb, kx2 = jax.random.split(key, 4)

    # Deterministic parameter init (mimics nn.Linear's uniform(-1/sqrt(D), 1/sqrt(D))),
    # stored in PyTorch layout (H, D) / (H,), then prepared ONCE.
    bound = 1.0 / jnp.sqrt(jnp.float32(INPUT_DIM))
    weight = jax.random.uniform(kw, (HIDDEN_SIZE, INPUT_DIM), jnp.float32,
                                minval=-bound, maxval=bound)
    bias = jax.random.uniform(kb, (HIDDEN_SIZE,), jnp.float32,
                              minval=-bound, maxval=bound)
    w_t, b = prepare_params(weight, bias)

    # Small batch: single-block, whole-in-VMEM path.
    x = jax.random.normal(kx, (BATCH, INPUT_DIM), jnp.float32)
    out = jax.block_until_ready(model_forward(x, w_t, b))
    ref = jnp.maximum(x @ w_t + b, 0.0)
    assert out.shape == (BATCH, HIDDEN_SIZE)
    assert jnp.allclose(out, ref, atol=1e-5, rtol=1e-5)

    # Larger batch: still fits VMEM -> still the single-block path (no grid steps).
    x_big = jax.random.normal(kx2, (512, INPUT_DIM), jnp.float32)
    out_big = jax.block_until_ready(model_forward(x_big, w_t, b))
    ref_big = jnp.maximum(x_big @ w_t + b, 0.0)
    assert out_big.shape == (512, HIDDEN_SIZE)
    assert jnp.allclose(out_big, ref_big, atol=1e-5, rtol=1e-5)

    # Force the gridded (2-block, megacore-parallel) fallback to verify it as well.
    out_grid = jax.block_until_ready(model_forward(x_big, w_t, b, single_block_budget=0))
    assert out_grid.shape == (512, HIDDEN_SIZE)
    assert jnp.allclose(out_grid, ref_big, atol=1e-5, rtol=1e-5)

    print("KERNEL_OK")
</pallas_src>

<mosaic_0001>
module attributes {stable_mosaic.version = 11 : i64} {
  func.func @linear_relu_kernel(%arg0: memref<8x32xf32, #tpu.memory_space<vmem>>, %arg1: memref<32x64xf32, #tpu.memory_space<vmem>>, %arg2: memref<1x64xf32, #tpu.memory_space<vmem>>, %arg3: memref<8x64xf32, #tpu.memory_space<vmem>>) attributes {dimension_semantics = [], scalar_prefetch = 0 : i64, scratch_operands = 0 : i64, tpu.core_type = #tpu.core_type<tc>} {
    %c0 = arith.constant 0 : index
    %c0_0 = arith.constant 0 : index
    %0 = vector.load %arg0[%c0, %c0_0] : memref<8x32xf32, #tpu.memory_space<vmem>>, vector<8x32xf32>
    %c0_1 = arith.constant 0 : index
    %c0_2 = arith.constant 0 : index
    %1 = vector.load %arg1[%c0_1, %c0_2] : memref<32x64xf32, #tpu.memory_space<vmem>>, vector<32x64xf32>
    %cst = arith.constant dense<0.000000e+00> : vector<8x64xf32>
    %2 = tpu.matmul %0, %1, %cst {dimension_numbers = #tpu.dot_dimension_numbers<[1], [0], [0], [1], [0, 0, 1, 1], [], []>} : vector<8x32xf32>, vector<32x64xf32>, vector<8x64xf32> -> vector<8x64xf32>
    %c0_3 = arith.constant 0 : index
    %c0_4 = arith.constant 0 : index
    %3 = vector.load %arg2[%c0_3, %c0_4] : memref<1x64xf32, #tpu.memory_space<vmem>>, vector<1x64xf32>
    %4 = vector.broadcast %3 : vector<1x64xf32> to vector<8x64xf32>
    %5 = arith.addf %2, %4 : vector<8x64xf32>
    %cst_5 = arith.constant 0.000000e+00 : f32
    %6 = vector.broadcast %cst_5 : f32 to vector<8x64xf32>
    %7 = arith.maximumf %5, %6 : vector<8x64xf32>
    %c0_6 = arith.constant 0 : index
    %c0_7 = arith.constant 0 : index
    %8 = vector.load %arg3[%c0_6, %c0_7] : memref<8x64xf32, #tpu.memory_space<vmem>>, vector<8x64xf32>
    tpu.vector_store %arg3[%c0_6, %c0_7], %7 {strides = array<i32>} : memref<8x64xf32, #tpu.memory_space<vmem>>, vector<8x64xf32>,
    return
  }
}

</mosaic_0001>

<bundles_post_ra>
// kernel: model_forward.1
= control target key start
LH: loop header
LB: loop body
LE: loop exit
PB: predicated region body
PF: predicated region fallthrough
CT: control target
= control target key end

     0   :  { %8 = vsyncpa [#allocation3], 0  ;;  %s276_s0 = inlined_call_operand.hbm [shape: f32[8,32], index: 0, kind: input, shape index: {}]   ;;  %s277_s1 = inlined_call_operand.hbm [shape: f32[32,64], index: 1, kind: input, shape index: {}]   ;;  %s278_s2 = inlined_call_operand.vmem [shape: f32[1,64], index: 2, kind: input, shape index: {}]   ;;  %s279_s3 = inlined_call_operand.hbm [shape: f32[8,64], index: 3, kind: output, shape index: {}]  }
   0x1   :  { %9 = vsyncpa [#allocation6], 0 }
   0x2   :  { %10 = vsyncpa [#allocation4], 0  ;;  %s237_s12 = smov [#allocation2]   ;;  %s238_s14 = smov [#allocation5]  }
   0x3   :  { %s17_s13 = sshll.u32 %s237_s12, 4  ;;  %s26_s15 = sshll.u32 %s238_s14, 4  ;;  %s18_s13 = int_to_ptr.vmem [resolvable:$true] %s17_s13  ;;  %s27_s15 = int_to_ptr.vmem [resolvable:$true] %s26_s15 }
   0x4   :  { %s179_s16 = scalar_lea.vmem %s18_s13, 128  ;;  %p184_p1 = scmp.lt.s32.totalorder %s18_s13, %s18_s13 }
   0x5   :  { %p180_p0 = scmp.ne.s32.totalorder %s18_s13, %s179_s16  ;;  %p185_p2 = scmp.lt.s32.totalorder %s179_s16, %s179_s16 }
   0x7   :  { %p186_p3 = por %p185_p2, %p184_p1 }
   0x9   :  { %p187_p4 = pnand %p186_p3, %p180_p0 }
   0xb   :  { %190 = shalt.err (!%p187_p4)
}
   0xc   :  { %20 = dma.hbm_to_vmem [thread:$0]  %s276_s0, 128, %s18_s13, [#allocation3]  }
   0xd   :  { %s199_s19 = scalar_lea.vmem %s27_s15, 512  ;;  %p204_p6 = scmp.lt.s32.totalorder %s27_s15, %s27_s15 }
   0xe   :  { %p200_p5 = scmp.ne.s32.totalorder %s27_s15, %s199_s19  ;;  %p205_p7 = scmp.lt.s32.totalorder %s199_s19, %s199_s19 }
  0x10   :  { %p206_p8 = por %p205_p7, %p204_p6 }
  0x12   :  { %p207_p9 = pnand %p206_p8, %p200_p5 }
  0x14   :  { %210 = shalt.err (!%p207_p9)
}
  0x15   :  { %s239_s20 = smov 128   ;;  %s240_s21 = smov 8  }
  0x16   :  { %32 = dma.hbm_to_vmem [thread:$0]  %s277_s1, 512, %s27_s15, [#allocation6], %s239_s20, %s239_s20, %s240_s21  }
  0x17   :  { %231 = dma.done.wait [#allocation3], 128  }
  0x18   :  { %232 = vsyncadd [#allocation3], 4294967168 }
  0x19   :  { %233 = dma.done.wait [#allocation6], 512  }
  0x1a   :  { %234 = vsyncadd [#allocation6], 4294966784  ;;  %v241_v0 = vmov 0.0   ;;  %vm242_vm0 = vmmov 0   ;;  %v45_v1 = vld [vmem:[#allocation5 + $0x18] sm:$0xff]  ;;  %v44_v2 = vld [vmem:[#allocation5 + $0x10] sm:$0xff] }
  0x1b   :  { %153 = vmatprep.subr.mxu0 %v241_v0  ;;  %161 = vmatprep.mubr.msk.f32.mxu0 %vm242_vm0, %v241_v0  ;;  %v43_v3 = vld [vmem:[#allocation5 + $0x8] sm:$0xff]  ;;  %v42_v4 = vld [vmem:[#allocation5] sm:$0xff]  ;;  %v41_v5 = vld [vmem:[#allocation2] sm:$0xff]  ;;  %vm53_vm1 = vcmask 261120   ;;  %s243_s24 = smov [#allocation7]   ;;  %vm128_vm2 = vcmask 523264  }
  0x1c   :  { %154 = vmatpush3.msra.mxu0 %v45_v1  ;;  %v146_v6 = vld [vmem:[%s278_s2] ss:$0 sm:$0xff]  ;;  %s136_s25 = sshll.u32 %s243_s24, 4  ;;  %s137_s25 = int_to_ptr.vmem [resolvable:$true] %s136_s25 }
  0x1d   :  { %155 = vmatprep.subr.mxu0 %v241_v0  ;;  %s211_s26 = scalar_lea.vmem %s137_s25, 128  ;;  %p216_p11 = scmp.lt.s32.totalorder %s137_s25, %s137_s25 }
  0x1e   :  { %156 = vmatpush3.msra.mxu0 %v44_v2  ;;  %p212_p10 = scmp.ne.s32.totalorder %s137_s25, %s211_s26  ;;  %p217_p12 = scmp.lt.s32.totalorder %s211_s26, %s211_s26 }
  0x1f   :  { %157 = vmatprep.subr.mxu0 %v241_v0 }
  0x20   :  { %158 = vmatpush3.msra.mxu0 %v43_v3  ;;  %p218_p13 = por %p217_p12, %p216_p11 }
  0x21   :  { %159 = vmatprep.subr.mxu0 %v241_v0 }
  0x22   :  { %160 = vmatpush3.msra.mxu0 %v42_v4  ;;  %p219_p0 = pnand %p218_p13, %p212_p10 }
  0x23   :  { %162 = vmatmul.mubr.msk.f32.vlgmr.msra.gmra.mxu0 %vm53_vm1, %v41_v5 }
  0xe3   :  { %v123_v7 = vpop.f32.mrf.mxu0 }
  0xe4   :  { %v124_v8 = vadd.f32 %v146_v6, %v123_v7 }
  0xe5   :  { %v163_v9 = vpop.f32.mrf.mxu0 }
  0xe6   :  { %v127_v10 = vmax.f32 %v124_v8, 0.0 }
  0xe8   :  { %129 = vst.msk [vmem:[#allocation7] sm:$0xff] %vm128_vm2, %v127_v10 }
  0xe9   :  { %222 = shalt.err (!%p219_p0)
}
  0xea   :  { %139 = dma.vmem_to_hbm [thread:$0]  %s137_s25, 128, %s279_s3, [#allocation4]  }
  0xeb   :  { %235 = dma.done.wait [#allocation4], 128  }
  0xec   :  { %236 = vsyncadd [#allocation4], 4294967168 }
  0xed   :  { %143 = vsyncpa [#allocation3], 1 }
  0xee   :  { %144 = vsyncpa [#allocation6], 1 }
  0xef   :  { %145 = vsyncpa [#allocation4], 1 }

</bundles_post_ra>
